<compile_context>
chip_gen: v5e
topology: v5e:2x2
jax: 0.10.0
libtpu: 0.0.40
codegen_flags: <defaults>
</compile_context>

<pallas_src>
import jax
import jax.numpy as jnp
from jax.experimental import pallas as pl
from jax.experimental.pallas import tpu as pltpu

_LANES = 1024          # lane-dense slab width (multiple of 128)
_SUBLANES = 8          # f32 sublane tile
_MAX_BLOCK_ROWS = 512  # 512 x 1024 x 4B = 2 MiB per block


def _noise_eval_kernel(x_ref, o_ref):
    x = x_ref[...].astype(jnp.float32) * 255.0
    # torch.round == round-half-to-even == jnp.round
    y = jnp.clip(jnp.round(x), 0.0, 255.0)
    o_ref[...] = (y * (1.0 / 255.0)).astype(o_ref.dtype)


def _noise_train_prng_kernel(seed_ref, x_ref, o_ref):
    # Independent per-block stream: seed the HW PRNG with (seed, block_id).
    pltpu.prng_seed(seed_ref[0], pl.program_id(0))
    x = x_ref[...].astype(jnp.float32) * 255.0
    bits = pltpu.bitcast(pltpu.prng_random_bits(x.shape), jnp.uint32)
    # Mantissa trick: 23 random bits -> float in [1, 2), shift to [-0.5, 0.5).
    mant = (bits >> jnp.uint32(9)) | jnp.uint32(0x3F800000)
    noise = pltpu.bitcast(mant, jnp.float32) - 1.5
    y = jnp.clip(x + noise, 0.0, 255.0)
    o_ref[...] = (y * (1.0 / 255.0)).astype(o_ref.dtype)


def _noise_train_noisein_kernel(x_ref, n_ref, o_ref):
    x = x_ref[...].astype(jnp.float32) * 255.0
    y = jnp.clip(x + n_ref[...], 0.0, 255.0)
    o_ref[...] = (y * (1.0 / 255.0)).astype(o_ref.dtype)


def _to_slab(x):
    """Flatten to a lane-dense (rows, _LANES) slab. Returns (slab, pad, rows, block_rows)."""
    total = x.size
    small_align = _SUBLANES * _LANES          # 8 KiB elems: single-block small inputs
    big_align = _MAX_BLOCK_ROWS * _LANES      # 512 K elems: evenly divisible big inputs
    align = small_align if total <= big_align else big_align
    padded = ((total + align - 1) // align) * align
    pad = padded - total
    xf = x.reshape(-1)
    if pad:
        xf = jnp.pad(xf, (0, pad))            # only copies when not already aligned
    slab = xf.reshape(-1, _LANES)
    rows = slab.shape[0]
    block_rows = rows if rows <= _MAX_BLOCK_ROWS else _MAX_BLOCK_ROWS
    return slab, pad, rows, block_rows


def noise_forward(x, train=False, seed=0):
    """JAX/Pallas equivalent of Noise.forward(input, train)."""
    orig_shape = x.shape
    orig_dtype = x.dtype
    total = x.size

    x2, pad, rows, br = _to_slab(x)
    grid = (rows // br,)
    blk = pl.BlockSpec((br, _LANES), lambda i: (i, 0))
    out_shape = jax.ShapeDtypeStruct((rows, _LANES), orig_dtype)
    itemsize = jnp.dtype(orig_dtype).itemsize
    cost = pl.CostEstimate(flops=5 * rows * _LANES, transcendentals=0,
                           bytes_accessed=2 * rows * _LANES * itemsize)
    cparams = pltpu.CompilerParams(dimension_semantics=("parallel",))

    if not train:
        out2 = pl.pallas_call(
            _noise_eval_kernel,
            out_shape=out_shape,
            grid=grid,
            in_specs=[blk],
            out_specs=blk,
            compiler_params=cparams,
            cost_estimate=cost,
        )(x2)
    elif jax.default_backend() == "tpu":
        seed_arr = jnp.asarray([seed], dtype=jnp.int32)
        grid_spec = pltpu.PrefetchScalarGridSpec(
            num_scalar_prefetch=1,
            grid=grid,
            in_specs=[pl.BlockSpec((br, _LANES), lambda i, s: (i, 0))],
            out_specs=pl.BlockSpec((br, _LANES), lambda i, s: (i, 0)),
        )
        out2 = pl.pallas_call(
            _noise_train_prng_kernel,
            out_shape=out_shape,
            grid_spec=grid_spec,
            compiler_params=cparams,
            cost_estimate=cost,
        )(seed_arr, x2)
    else:
        # TODO(synk): pltpu.prng_* has no CPU/interpret lowering; on non-TPU
        # backends precompute the uniform noise and feed it as a kernel input.
        noise = jax.random.uniform(jax.random.PRNGKey(seed), (rows, _LANES),
                                   dtype=jnp.float32, minval=-0.5, maxval=0.5)
        out2 = pl.pallas_call(
            _noise_train_noisein_kernel,
            out_shape=out_shape,
            grid=grid,
            in_specs=[blk, blk],
            out_specs=blk,
            compiler_params=cparams,
            cost_estimate=cost,
        )(x2, noise)

    out_flat = out2.reshape(-1)
    if pad:
        out_flat = out_flat[:total]
    return out_flat.reshape(orig_shape)


if __name__ == "__main__":
    key = jax.random.PRNGKey(0)
    # NCHW input, values in [0, 1] like an image tensor.
    x = jax.random.uniform(key, (2, 4, 16, 16), dtype=jnp.float32)

    # Eval path (deterministic quantization): check against a pure-JAX reference.
    out_eval = jax.block_until_ready(noise_forward(x, train=False))
    ref_eval = jnp.clip(jnp.round(x * 255.0), 0.0, 255.0) / 255.0
    assert out_eval.shape == x.shape and out_eval.dtype == x.dtype
    assert jnp.allclose(out_eval, ref_eval, atol=1e-6), "eval path mismatch"

    # Train path (adds uniform noise in [-0.5, 0.5) on the 0..255 scale).
    out_train = jax.block_until_ready(noise_forward(x, train=True, seed=1234))
    assert out_train.shape == x.shape and out_train.dtype == x.dtype
    # Noise magnitude bound: |out_train*255 - x*255| <= 0.5 (clamp only shrinks it).
    diff = jnp.abs(out_train * 255.0 - jnp.clip(x * 255.0, 0.0, 255.0))
    assert float(jnp.max(diff)) <= 0.5 + 1e-4, "train noise out of range"
    assert float(jnp.min(out_train)) >= 0.0 and float(jnp.max(out_train)) <= 1.0

    print("KERNEL_OK")
</pallas_src>

<mosaic_0001>
module attributes {stable_mosaic.version = 11 : i64} {
  func.func @_noise_eval_kernel(%arg0: i32, %arg1: memref<8x1024xf32, #tpu.memory_space<vmem>>, %arg2: memref<8x1024xf32, #tpu.memory_space<vmem>>) attributes {dimension_semantics = [#tpu.dimension_semantics<parallel>], iteration_bounds = array<i64: 1>, scalar_prefetch = 0 : i64, scratch_operands = 0 : i64, tpu.core_type = #tpu.core_type<tc>, window_params = [{transform_indices = @transform_0, window_bounds = array<i64: 8, 1024>}, {transform_indices = @transform_1, window_bounds = array<i64: 8, 1024>}]} {
    %c0 = arith.constant 0 : index
    %c0_0 = arith.constant 0 : index
    %0 = vector.load %arg1[%c0, %c0_0] : memref<8x1024xf32, #tpu.memory_space<vmem>>, vector<8x1024xf32>
    %cst = arith.constant 2.550000e+02 : f32
    %1 = vector.broadcast %cst : f32 to vector<8x1024xf32>
    %2 = arith.mulf %0, %1 : vector<8x1024xf32>
    %3 = math.roundeven %2 : vector<8x1024xf32>
    %cst_1 = arith.constant 0.000000e+00 : f32
    %cst_2 = arith.constant 2.550000e+02 : f32
    %4 = vector.broadcast %cst_1 : f32 to vector<8x1024xf32>
    %5 = arith.maximumf %4, %3 : vector<8x1024xf32>
    %6 = vector.broadcast %cst_2 : f32 to vector<8x1024xf32>
    %7 = arith.minimumf %6, %5 : vector<8x1024xf32>
    %cst_3 = arith.constant 0.00392156886 : f32
    %8 = vector.broadcast %cst_3 : f32 to vector<8x1024xf32>
    %9 = arith.mulf %7, %8 : vector<8x1024xf32>
    %c0_4 = arith.constant 0 : index
    %c0_5 = arith.constant 0 : index
    %10 = vector.load %arg2[%c0_4, %c0_5] : memref<8x1024xf32, #tpu.memory_space<vmem>>, vector<8x1024xf32>
    tpu.vector_store %arg2[%c0_4, %c0_5], %9 {strides = array<i32>} : memref<8x1024xf32, #tpu.memory_space<vmem>>, vector<8x1024xf32>,
    return
  }
  func.func @transform_0(%arg0: i32) -> (i32, i32) {
    %c0_i32 = arith.constant 0 : i32
    %c0_i32_0 = arith.constant 0 : i32
    return %arg0, %c0_i32 : i32, i32
  }
  func.func @transform_1(%arg0: i32) -> (i32, i32) {
    %c0_i32 = arith.constant 0 : i32
    %c0_i32_0 = arith.constant 0 : i32
    return %arg0, %c0_i32 : i32, i32
  }
}

</mosaic_0001>

<bundles_post_ra>
// kernel: tpu_custom_call.1
= control target key start
LH: loop header
LB: loop body
LE: loop exit
PB: predicated region body
PF: predicated region fallthrough
CT: control target
= control target key end

     0   :  { %6 = vsyncpa [#allocation3], 0  ;;  %s274_s0 = inlined_call_operand.hbm [shape: f32[8,1024], index: 0, kind: input, shape index: {}]   ;;  %s275_s1 = inlined_call_operand.hbm [shape: f32[8,1024], index: 1, kind: output, shape index: {}]  }
   0x1   :  { %7 = vsyncpa [#allocation4], 0  ;;  %s13_s8 = sshll.u32 %s274_s0, 4  ;;  %s214_s9 = smov [#allocation2]   ;;  %s14_s8 = int_to_ptr.hbm [resolvable:$true] %s13_s8 }
   0x2   :  { %s15_s10 = sshll.u32 %s214_s9, 4  ;;  %s16_s10 = int_to_ptr.vmem [resolvable:$true] %s15_s10 }
   0x3   :  { %18 = dma.hbm_to_vmem [thread:$0]  %s14_s8, 1024, %s16_s10, [#allocation3]  }
   0x4   :  { %210 = dma.done.wait [#allocation3], 1024  }
   0x5   :  { %211 = vsyncadd [#allocation3], 4294966272  ;;  %v23_v0 = vld [vmem:[#allocation2] sm:$0xff]  ;;  %v24_v1 = vld [vmem:[#allocation2 + $0x8] sm:$0xff]  ;;  %s215_s0 = smov [#allocation5]   ;;  %s86_s14 = sshll.u32 %s275_s1, 4  ;;  %s87_s14 = int_to_ptr.hbm [resolvable:$true] %s86_s14 }
   0x6   :  { %v25_v2 = vld [vmem:[#allocation2 + $0x10] sm:$0xff]  ;;  %v31_v3 = vmul.f32 255.0, %v23_v0  ;;  %v32_v4 = vmul.f32 255.0, %v24_v1  ;;  %v26_v6 = vld [vmem:[#allocation2 + $0x18] sm:$0xff]  ;;  %v27_v7 = vld [vmem:[#allocation2 + $0x20] sm:$0xff]  ;;  %s84_s11 = sshll.u32 %s215_s0, 4  ;;  %s85_s11 = int_to_ptr.vmem [resolvable:$true] %s84_s11 }
   0x7   :  { %v33_v5 = vmul.f32 255.0, %v25_v2  ;;  %v28_v8 = vld [vmem:[#allocation2 + $0x28] sm:$0xff]  ;;  %v34_v9 = vmul.f32 255.0, %v26_v6  ;;  %v35_v10 = vmul.f32 255.0, %v27_v7  ;;  %v29_v48 = vld [vmem:[#allocation2 + $0x30] sm:$0xff]  ;;  %v30_v53 = vld [vmem:[#allocation2 + $0x38] sm:$0xff] }
   0x8   :  { %v229_v11 = vmul.f32 255.0, %v28_v8  ;;  %v96_v12 = vand.u32 2147483647, %v31_v3  ;;  %v98_v13 = vcvt.f32.s32 %v31_v3  ;;  %v101_v14 = vand.u32 2147483648, %v31_v3 }
   0x9   :  { %v104_v15 = vand.u32 2147483647, %v32_v4  ;;  %v106_v16 = vcvt.f32.s32 %v32_v4  ;;  %v109_v17 = vand.u32 2147483648, %v32_v4  ;;  %v112_v18 = vand.u32 2147483647, %v33_v5 }
   0xa   :  { %v114_v19 = vcvt.f32.s32 %v33_v5  ;;  %vm231_vm0 = vcmp.lt.f32.partialorder %v96_v12, 8388608.0  ;;  %v99_v21 = vcvt.s32.f32 %v98_v13  ;;  %v117_v23 = vand.u32 2147483648, %v33_v5 }
   0xb   :  { %vm235_vm1 = vcmp.lt.f32.partialorder %v104_v15, 8388608.0  ;;  %v107_v24 = vcvt.s32.f32 %v106_v16  ;;  %vm239_vm2 = vcmp.lt.f32.partialorder %v112_v18, 8388608.0  ;;  %v120_v27 = vand.u32 2147483647, %v34_v9 }
   0xc   :  { %v115_v26 = vcvt.s32.f32 %v114_v19  ;;  %v100_v28 = vand.u32 2147483647, %v99_v21  ;;  %v122_v29 = vcvt.f32.s32 %v34_v9  ;;  %v125_v30 = vand.u32 2147483648, %v34_v9 }
   0xd   :  { %v128_v31 = vand.u32 2147483647, %v35_v10  ;;  %v108_v32 = vand.u32 2147483647, %v107_v24  ;;  %vm243_vm3 = vcmp.lt.f32.partialorder %v120_v27, 8388608.0  ;;  %v130_v35 = vcvt.f32.s32 %v35_v10 }
   0xe   :  { %v116_v33 = vand.u32 2147483647, %v115_v26  ;;  %v102_v36 = vor.u32 %v101_v14, %v100_v28  ;;  %v123_v37 = vcvt.s32.f32 %v122_v29  ;;  %v133_v39 = vand.u32 2147483648, %v35_v10 }
   0xf   :  { %vm247_vm4 = vcmp.lt.f32.partialorder %v128_v31, 8388608.0  ;;  %v110_v40 = vor.u32 %v109_v17, %v108_v32  ;;  %v131_v42 = vcvt.s32.f32 %v130_v35  ;;  %v136_v43 = vand.u32 2147483647, %v229_v11 }
  0x10   :  { %v118_v41 = vor.u32 %v117_v23, %v116_v33  ;;  %v103_v44 = vsel %vm231_vm0, %v102_v36, %v31_v3  ;;  %v124_v45 = vand.u32 2147483647, %v123_v37  ;;  %v138_v46 = vcvt.f32.s32 %v229_v11 }
  0x11   :  { %v141_v47 = vand.u32 2147483648, %v229_v11  ;;  %v47_v49 = vmax.f32 %v103_v44, 0.0  ;;  %v111_v50 = vsel %vm235_vm1, %v110_v40, %v32_v4  ;;  %v132_v52 = vand.u32 2147483647, %v131_v42 }
  0x12   :  { %v119_v51 = vsel %vm239_vm2, %v118_v41, %v33_v5  ;;  %v48_v54 = vmax.f32 %v111_v50, 0.0  ;;  %v126_v56 = vor.u32 %v125_v30, %v124_v45  ;;  %vm260_vm5 = vcmp.lt.f32.partialorder %v136_v43, 8388608.0 }
  0x13   :  { %v49_v55 = vmax.f32 %v119_v51, 0.0  ;;  %v55_v58 = vmin.f32 %v47_v49, 255.0  ;;  %v134_v59 = vor.u32 %v133_v39, %v132_v52  ;;  %v139_v60 = vcvt.s32.f32 %v138_v46 }
  0x14   :  { %v37_v61 = vmul.f32 255.0, %v29_v48  ;;  %v56_v62 = vmin.f32 %v48_v54, 255.0  ;;  %v127_v0 = vsel %vm243_vm3, %v126_v56, %v34_v9  ;;  %v38_v1 = vmul.f32 255.0, %v30_v53 }
  0x15   :  { %v57_v63 = vmin.f32 %v49_v55, 255.0  ;;  %v63_v2 = vmul.f32 0.003921569, %v55_v58  ;;  %v50_v3 = vmax.f32 %v127_v0, 0.0  ;;  %v135_v4 = vsel %vm247_vm4, %v134_v59, %v35_v10 }
  0x16   :  { %v140_v5 = vand.u32 2147483647, %v139_v60  ;;  %v64_v6 = vmul.f32 0.003921569, %v56_v62  ;;  %v51_v8 = vmax.f32 %v135_v4, 0.0  ;;  %v146_v12 = vcvt.f32.s32 %v37_v61 }
  0x17   :  { %v65_v7 = vmul.f32 0.003921569, %v57_v63  ;;  %71 = vst [vmem:[#allocation5] sm:$0xff] %v63_v2  ;;  %v58_v13 = vmin.f32 %v50_v3, 255.0  ;;  %v144_v15 = vand.u32 2147483647, %v37_v61  ;;  %v154_v9 = vcvt.f32.s32 %v38_v1 }
  0x18   :  { %v142_v14 = vor.u32 %v141_v47, %v140_v5  ;;  %72 = vst [vmem:[#allocation5 + $0x8] sm:$0xff] %v64_v6  ;;  %v59_v16 = vmin.f32 %v51_v8, 255.0  ;;  %v147_v17 = vcvt.s32.f32 %v146_v12  ;;  %v149_v18 = vand.u32 2147483648, %v37_v61 }
  0x19   :  { %73 = vst [vmem:[#allocation5 + $0x10] sm:$0xff] %v65_v7  ;;  %v66_v19 = vmul.f32 0.003921569, %v58_v13  ;;  %v152_v20 = vand.u32 2147483647, %v38_v1  ;;  %vm145_vm6 = vcmp.lt.f32.partialorder %v144_v15, 8388608.0  ;;  %v155_v24 = vcvt.s32.f32 %v154_v9 }
  0x1a   :  { %v143_v10 = vsel %vm260_vm5, %v142_v14, %v229_v11  ;;  %v67_v21 = vmul.f32 0.003921569, %v59_v16  ;;  %v148_v23 = vand.u32 2147483647, %v147_v17  ;;  %v157_v25 = vand.u32 2147483648, %v38_v1 }
  0x1b   :  { %v52_v22 = vmax.f32 %v143_v10, 0.0  ;;  %74 = vst [vmem:[#allocation5 + $0x18] sm:$0xff] %v66_v19  ;;  %v156_v28 = vand.u32 2147483647, %v155_v24  ;;  %vm153_vm7 = vcmp.lt.f32.partialorder %v152_v20, 8388608.0 }
  0x1c   :  { %75 = vst [vmem:[#allocation5 + $0x20] sm:$0xff] %v67_v21  ;;  %v150_v27 = vor.u32 %v149_v18, %v148_v23 }
  0x1d   :  { %v60_v26 = vmin.f32 %v52_v22, 255.0  ;;  %v158_v32 = vor.u32 %v157_v25, %v156_v28 }
  0x1e   :  { %v151_v30 = vsel %vm145_vm6, %v150_v27, %v37_v61 }
  0x1f   :  { %v68_v29 = vmul.f32 0.003921569, %v60_v26  ;;  %v53_v31 = vmax.f32 %v151_v30, 0.0  ;;  %v159_v11 = vsel %vm153_vm7, %v158_v32, %v38_v1 }
  0x20   :  { %v54_v34 = vmax.f32 %v159_v11, 0.0 }
  0x21   :  { %76 = vst [vmem:[#allocation5 + $0x28] sm:$0xff] %v68_v29  ;;  %v61_v33 = vmin.f32 %v53_v31, 255.0 }
  0x22   :  { %v62_v36 = vmin.f32 %v54_v34, 255.0 }
  0x23   :  { %v69_v35 = vmul.f32 0.003921569, %v61_v33 }
  0x24   :  { %v70_v37 = vmul.f32 0.003921569, %v62_v36 }
  0x25   :  { %77 = vst [vmem:[#allocation5 + $0x30] sm:$0xff] %v69_v35 }
  0x26   :  { %78 = vst [vmem:[#allocation5 + $0x38] sm:$0xff] %v70_v37 }
  0x27   :  { %89 = dma.vmem_to_hbm [thread:$0]  %s85_s11, 1024, %s87_s14, [#allocation4]  }
  0x28   :  { %212 = dma.done.wait [#allocation4], 1024  }
  0x29   :  { %213 = vsyncadd [#allocation4], 4294966272 }
  0x2a   :  { %94 = vsyncpa [#allocation3], 1 }
  0x2b   :  { %95 = vsyncpa [#allocation4], 1 }

</bundles_post_ra>
